<compile_context>
chip_gen: v7x
topology: tpu7x:2x2x1
jax: 0.10.0
libtpu: 0.0.40
codegen_flags: <defaults>
</compile_context>

<pallas_src>
import functools
import math

import jax
import jax.numpy as jnp
from jax.experimental import pallas as pl
from jax.experimental.pallas import tpu as pltpu


def _round_up(x, m):
    return (x + m - 1) // m * m


def _pick_node_tile(n):
    """Size-aware node tile: large tiles for large graphs, but always keep at
    least ~4 row blocks so v7x's two TensorCores both get work and the
    software pipeline has depth.  tile_m == tile_k_nodes -> no lcm blowup."""
    for t in (1024, 512, 256):
        if n >= 4 * t:
            return t
    return 128


def _vmem_limit(estimate_bytes):
    """Explicit scoped-VMEM limit: 2x headroom over the estimated working set,
    clamped to [32 MiB, 64 MiB] so the sizing is also valid on v7x."""
    return int(min(64 << 20, max(32 << 20, 2 * int(estimate_bytes))))


# ------------------------------ Pallas kernels ------------------------------ #
def _xw_kernel(x_ref, w_ref, h_ref, acc_ref):
    """H = X @ W   (bf16 operands, f32 accumulate, bf16 output for stage 2)."""
    k = pl.program_id(1)

    @pl.when(k == 0)
    def _init():
        acc_ref[...] = jnp.zeros_like(acc_ref)

    acc_ref[...] += jnp.dot(x_ref[...], w_ref[...],
                            preferred_element_type=jnp.float32)

    @pl.when(k == pl.num_programs(1) - 1)
    def _store():
        h_ref[...] = acc_ref[...].astype(h_ref.dtype)


def _prop_kernel(adj_ref, h_ref, b_ref, o_ref, acc_ref, *, tile_k, full_h):
    """out = adj @ H + bias.  adj streamed once; H either fully VMEM-resident
    (full_h=True, slice per k step) or streamed as (tile_k, f_out_p) blocks."""
    k = pl.program_id(1)

    @pl.when(k == 0)
    def _init():
        acc_ref[...] = jnp.zeros_like(acc_ref)

    if full_h:
        off = pl.multiple_of(k * tile_k, tile_k)
        h_blk = h_ref[pl.ds(off, tile_k), :]
    else:
        h_blk = h_ref[...]

    acc_ref[...] += jnp.dot(adj_ref[...], h_blk,
                            preferred_element_type=jnp.float32)

    @pl.when(k == pl.num_programs(1) - 1)
    def _store():
        o_ref[...] = (acc_ref[...] + b_ref[...]).astype(o_ref.dtype)


# --------------------------------- Wrappers ---------------------------------- #
def prepare_adjacency(adj, node_tile):
    """Pad to a tile-aligned square and cast to bf16 ONCE, outside the jitted
    forward (adj is constant across layers / training steps)."""
    n = adj.shape[0]
    n_p = _round_up(n, node_tile)
    return jnp.zeros((n_p, n_p), jnp.bfloat16).at[:n, :n].set(
        adj.astype(jnp.bfloat16))


def graph_convolution(x, adj_p, weight, bias=None, *, node_tile=128,
                      h_resident_budget=8 << 20):
    """Pallas implementation of GraphConvolution.forward(input, adj).

    `adj_p` must be the tile-aligned, zero-padded bf16 adjacency produced by
    `prepare_adjacency(adj, node_tile)`."""
    n, f_in = x.shape
    f_out = weight.shape[1]
    n_p = adj_p.shape[0]
    assert n_p % node_tile == 0 and n_p >= n

    tile_m = node_tile           # row tile (both stages)
    tile_kn = node_tile          # stage-2 node-contraction tile (== tile_m)

    f_out_p = _round_up(f_out, 128)          # lane-dense, single output tile wide
    f_in_128 = _round_up(f_in, 128)
    if f_in_128 <= 2048:                     # whole contraction in one block
        tile_kf, f_in_p = f_in_128, f_in_128
    else:
        tile_kf, f_in_p = 512, _round_up(f_in, 512)

    if bias is None:
        bias = jnp.zeros((f_out,), jnp.float32)

    # Small per-call pads.  bf16 X / W halves the stage-1 HBM stream; zero
    # padding is exact for the matmuls and the bias broadcast.
    x_p = jnp.zeros((n_p, f_in_p), jnp.bfloat16).at[:n, :f_in].set(
        x.astype(jnp.bfloat16))
    w_p = jnp.zeros((f_in_p, f_out_p), jnp.bfloat16).at[:f_in, :f_out].set(
        weight.astype(jnp.bfloat16))
    b_p = jnp.zeros((1, f_out_p), jnp.float32).at[0, :f_out].set(
        bias.reshape(-1).astype(jnp.float32))

    # -------- stage 1: H = X @ W  (computed once, stored bf16) -------- #
    xw_vmem = (2 * tile_m * tile_kf * 2 + 2 * tile_kf * f_out_p * 2
               + 2 * tile_m * f_out_p * 2 + tile_m * f_out_p * 4)
    h = pl.pallas_call(
        _xw_kernel,
        out_shape=jax.ShapeDtypeStruct((n_p, f_out_p), jnp.bfloat16),
        grid_spec=pltpu.PrefetchScalarGridSpec(
            num_scalar_prefetch=0,
            grid=(n_p // tile_m, f_in_p // tile_kf),
            in_specs=[pl.BlockSpec((tile_m, tile_kf), lambda i, k: (i, k)),
                      pl.BlockSpec((tile_kf, f_out_p), lambda i, k: (k, 0))],
            out_specs=pl.BlockSpec((tile_m, f_out_p), lambda i, k: (i, 0)),
            scratch_shapes=[pltpu.VMEM((tile_m, f_out_p), jnp.float32)]),
        compiler_params=pltpu.CompilerParams(
            dimension_semantics=("parallel", "arbitrary"),
            vmem_limit_bytes=_vmem_limit(xw_vmem)),
        cost_estimate=pl.CostEstimate(
            flops=2 * n_p * f_in_p * f_out_p, transcendentals=0,
            bytes_accessed=(n_p * f_in_p + f_in_p * f_out_p + n_p * f_out_p) * 2),
    )(x_p, w_p)

    # -------- stage 2: out = adj @ H + bias  (adj streamed exactly once) -------- #
    h_bytes = n_p * f_out_p * 2
    full_h = h_bytes <= h_resident_budget
    if full_h:
        # Whole H resident in VMEM; constant block index -> DMA'd once.
        h_spec = pl.BlockSpec((n_p, f_out_p), lambda i, k: (0, 0))
        h_vmem = 2 * h_bytes
    else:
        h_spec = pl.BlockSpec((tile_kn, f_out_p), lambda i, k: (k, 0))
        h_vmem = 2 * tile_kn * f_out_p * 2

    prop_vmem = (2 * tile_m * tile_kn * 2 + h_vmem + 2 * f_out_p * 4
                 + 2 * tile_m * f_out_p * 4 + tile_m * f_out_p * 4)
    prop_kernel = functools.partial(_prop_kernel, tile_k=tile_kn, full_h=full_h)
    out_p = pl.pallas_call(
        prop_kernel,
        out_shape=jax.ShapeDtypeStruct((n_p, f_out_p), jnp.float32),
        grid_spec=pltpu.PrefetchScalarGridSpec(
            num_scalar_prefetch=0,
            grid=(n_p // tile_m, n_p // tile_kn),
            in_specs=[pl.BlockSpec((tile_m, tile_kn), lambda i, k: (i, k)),
                      h_spec,
                      pl.BlockSpec((1, f_out_p), lambda i, k: (0, 0))],
            out_specs=pl.BlockSpec((tile_m, f_out_p), lambda i, k: (i, 0)),
            scratch_shapes=[pltpu.VMEM((tile_m, f_out_p), jnp.float32)]),
        compiler_params=pltpu.CompilerParams(
            dimension_semantics=("parallel", "arbitrary"),
            vmem_limit_bytes=_vmem_limit(prop_vmem)),
        cost_estimate=pl.CostEstimate(
            flops=2 * n_p * n_p * f_out_p, transcendentals=0,
            bytes_accessed=n_p * n_p * 2 + n_p * f_out_p * 2 + f_out_p * 4
            + n_p * f_out_p * 4),
    )(adj_p, h, b_p)

    return out_p[:n, :f_out]


# ----------------------------------- Main ------------------------------------ #
if __name__ == "__main__":
    N, F_IN, F_OUT = 300, 48, 40   # small, non-tile-aligned on purpose

    key = jax.random.PRNGKey(0)
    k_x, k_a, k_w, k_b = jax.random.split(key, 4)

    x = jax.random.normal(k_x, (N, F_IN), jnp.float32)

    # Symmetrically-normalized dense adjacency (the usual GCN \hat{A}).
    a = (jax.random.uniform(k_a, (N, N)) < 0.3).astype(jnp.float32)
    a = jnp.minimum(a + a.T + jnp.eye(N, dtype=jnp.float32), 1.0)
    d_inv_sqrt = jax.lax.rsqrt(a.sum(axis=-1))
    adj = a * d_inv_sqrt[:, None] * d_inv_sqrt[None, :]

    # Module's reset_parameters(): normal_(-stdv, stdv) with stdv = 1/sqrt(out_features).
    stdv = 1.0 / math.sqrt(F_OUT)
    weight = -stdv + stdv * jax.random.normal(k_w, (F_IN, F_OUT), jnp.float32)
    bias = -stdv + stdv * jax.random.normal(k_b, (F_OUT,), jnp.float32)

    # Hoisted out of the per-call path: adj is constant across layers / steps,
    # so pad + cast it to bf16 exactly once (perf-review item).
    node_tile = _pick_node_tile(N)
    adj_p = jax.block_until_ready(prepare_adjacency(adj, node_tile))

    fwd = jax.jit(functools.partial(graph_convolution, node_tile=node_tile))
    out = jax.block_until_ready(fwd(x, adj_p, weight, bias))

    # Reference (f32): adj @ (x @ W) + b.  bf16 streams -> loose tolerance.
    ref = adj @ (x @ weight) + bias[None, :]
    assert out.shape == (N, F_OUT)
    assert jnp.all(jnp.isfinite(out))
    max_err = float(jnp.max(jnp.abs(out - ref)))
    assert jnp.allclose(out, ref, rtol=5e-2, atol=5e-2), max_err
    print("KERNEL_OK")
</pallas_src>

<mosaic_0001>
module attributes {stable_mosaic.version = 11 : i64} {
  func.func @_prop_kernel(%arg0: i32, %arg1: i32, %arg2: memref<128x128xbf16, #tpu.memory_space<vmem>>, %arg3: memref<384x128xbf16, #tpu.memory_space<vmem>>, %arg4: memref<1x128xf32, #tpu.memory_space<vmem>>, %arg5: memref<128x128xf32, #tpu.memory_space<vmem>>, %arg6: memref<128x128xf32, #tpu.memory_space<vmem>>) attributes {dimension_semantics = [#tpu.dimension_semantics<parallel>, #tpu.dimension_semantics<arbitrary>], iteration_bounds = array<i64: 3, 3>, scalar_prefetch = 0 : i64, scratch_operands = 1 : i64, tpu.core_type = #tpu.core_type<tc>, window_params = [{transform_indices = @transform_0, window_bounds = array<i64: 128, 128>}, {pipeline_mode = #tpu.pipeline_mode<synchronous>, transform_indices = @transform_1, window_bounds = array<i64: 384, 128>}, {pipeline_mode = #tpu.pipeline_mode<synchronous>, transform_indices = @transform_2, window_bounds = array<i64: 1, 128>}, {transform_indices = @transform_3, window_bounds = array<i64: 128, 128>}]} {
    %c0_i32 = arith.constant 0 : i32
    %0 = arith.cmpi eq, %arg1, %c0_i32 : i32
    %1 = arith.extui %0 : i1 to i32
    %c0_i32_0 = arith.constant 0 : i32
    %2 = arith.cmpi ne, %1, %c0_i32_0 : i32
    scf.if %2 {
      %cst_8 = arith.constant 0.000000e+00 : f32
      %15 = vector.broadcast %cst_8 : f32 to vector<128x128xf32>
      %c0_9 = arith.constant 0 : index
      %c0_10 = arith.constant 0 : index
      %16 = vector.load %arg6[%c0_9, %c0_10] : memref<128x128xf32, #tpu.memory_space<vmem>>, vector<128x128xf32>
      tpu.vector_store %arg6[%c0_9, %c0_10], %15 {strides = array<i32>} : memref<128x128xf32, #tpu.memory_space<vmem>>, vector<128x128xf32>,
    } else {
    }
    %c128_i32 = arith.constant 128 : i32
    %3 = arith.muli %arg1, %c128_i32 : i32
    %4 = tpu.assume_multiple %3, 128 : i32
    %5 = arith.index_cast %4 : i32 to index
    %c0 = arith.constant 0 : index
    %6 = vector.load %arg3[%5, %c0] : memref<384x128xbf16, #tpu.memory_space<vmem>>, vector<128x128xbf16>
    %c0_1 = arith.constant 0 : index
    %c0_2 = arith.constant 0 : index
    %7 = vector.load %arg6[%c0_1, %c0_2] : memref<128x128xf32, #tpu.memory_space<vmem>>, vector<128x128xf32>
    %c0_3 = arith.constant 0 : index
    %c0_4 = arith.constant 0 : index
    %8 = vector.load %arg2[%c0_3, %c0_4] : memref<128x128xbf16, #tpu.memory_space<vmem>>, vector<128x128xbf16>
    %cst = arith.constant dense<0.000000e+00> : vector<128x128xf32>
    %9 = tpu.matmul %8, %6, %cst {dimension_numbers = #tpu.dot_dimension_numbers<[1], [0], [0], [1], [0, 0, 1, 1], [], []>} : vector<128x128xbf16>, vector<128x128xbf16>, vector<128x128xf32> -> vector<128x128xf32>
    %10 = arith.addf %7, %9 : vector<128x128xf32>
    %c0_5 = arith.constant 0 : index
    %c0_6 = arith.constant 0 : index
    %11 = vector.load %arg6[%c0_5, %c0_6] : memref<128x128xf32, #tpu.memory_space<vmem>>, vector<128x128xf32>
    tpu.vector_store %arg6[%c0_5, %c0_6], %10 {strides = array<i32>} : memref<128x128xf32, #tpu.memory_space<vmem>>, vector<128x128xf32>,
    %c2_i32 = arith.constant 2 : i32
    %12 = arith.cmpi eq, %arg1, %c2_i32 : i32
    %13 = arith.extui %12 : i1 to i32
    %c0_i32_7 = arith.constant 0 : i32
    %14 = arith.cmpi ne, %13, %c0_i32_7 : i32
    scf.if %14 {
      %c0_8 = arith.constant 0 : index
      %c0_9 = arith.constant 0 : index
      %15 = vector.load %arg6[%c0_8, %c0_9] : memref<128x128xf32, #tpu.memory_space<vmem>>, vector<128x128xf32>
      %c0_10 = arith.constant 0 : index
      %c0_11 = arith.constant 0 : index
      %16 = vector.load %arg4[%c0_10, %c0_11] : memref<1x128xf32, #tpu.memory_space<vmem>>, vector<1x128xf32>
      %17 = vector.broadcast %16 : vector<1x128xf32> to vector<128x128xf32>
      %18 = arith.addf %15, %17 : vector<128x128xf32>
      %c0_12 = arith.constant 0 : index
      %c0_13 = arith.constant 0 : index
      %19 = vector.load %arg5[%c0_12, %c0_13] : memref<128x128xf32, #tpu.memory_space<vmem>>, vector<128x128xf32>
      tpu.vector_store %arg5[%c0_12, %c0_13], %18 {strides = array<i32>} : memref<128x128xf32, #tpu.memory_space<vmem>>, vector<128x128xf32>,
    } else {
    }
    return
  }
  func.func @transform_0(%arg0: i32, %arg1: i32) -> (i32, i32) {
    %c0_i32 = arith.constant 0 : i32
    return %arg0, %arg1 : i32, i32
  }
  func.func @transform_1(%arg0: i32, %arg1: i32) -> (i32, i32) {
    %c0_i32 = arith.constant 0 : i32
    %c0_i32_0 = arith.constant 0 : i32
    %c0_i32_1 = arith.constant 0 : i32
    return %c0_i32, %c0_i32_0 : i32, i32
  }
  func.func @transform_2(%arg0: i32, %arg1: i32) -> (i32, i32) {
    %c0_i32 = arith.constant 0 : i32
    %c0_i32_0 = arith.constant 0 : i32
    %c0_i32_1 = arith.constant 0 : i32
    return %c0_i32, %c0_i32_0 : i32, i32
  }
  func.func @transform_3(%arg0: i32, %arg1: i32) -> (i32, i32) {
    %c0_i32 = arith.constant 0 : i32
    %c0_i32_0 = arith.constant 0 : i32
    return %arg0, %c0_i32 : i32, i32
  }
}

module attributes {stable_mosaic.version = 11 : i64} {
  func.func @_xw_kernel(%arg0: i32, %arg1: i32, %arg2: memref<128x128xbf16, #tpu.memory_space<vmem>>, %arg3: memref<128x128xbf16, #tpu.memory_space<vmem>>, %arg4: memref<128x128xbf16, #tpu.memory_space<vmem>>, %arg5: memref<128x128xf32, #tpu.memory_space<vmem>>) attributes {dimension_semantics = [#tpu.dimension_semantics<parallel>, #tpu.dimension_semantics<arbitrary>], iteration_bounds = array<i64: 3, 1>, scalar_prefetch = 0 : i64, scratch_operands = 1 : i64, tpu.core_type = #tpu.core_type<tc>, window_params = [{transform_indices = @transform_0, window_bounds = array<i64: 128, 128>}, {transform_indices = @transform_1, window_bounds = array<i64: 128, 128>}, {transform_indices = @transform_2, window_bounds = array<i64: 128, 128>}]} {
    %c0_i32 = arith.constant 0 : i32
    %0 = arith.cmpi eq, %arg1, %c0_i32 : i32
    %1 = arith.extui %0 : i1 to i32
    %c0_i32_0 = arith.constant 0 : i32
    %2 = arith.cmpi ne, %1, %c0_i32_0 : i32
    scf.if %2 {
      %cst_10 = arith.constant 0.000000e+00 : f32
      %12 = vector.broadcast %cst_10 : f32 to vector<128x128xf32>
      %c0_11 = arith.constant 0 : index
      %c0_12 = arith.constant 0 : index
      %13 = vector.load %arg5[%c0_11, %c0_12] : memref<128x128xf32, #tpu.memory_space<vmem>>, vector<128x128xf32>
      tpu.vector_store %arg5[%c0_11, %c0_12], %12 {strides = array<i32>} : memref<128x128xf32, #tpu.memory_space<vmem>>, vector<128x128xf32>,
    } else {
    }
    %c0 = arith.constant 0 : index
    %c0_1 = arith.constant 0 : index
    %3 = vector.load %arg5[%c0, %c0_1] : memref<128x128xf32, #tpu.memory_space<vmem>>, vector<128x128xf32>
    %c0_2 = arith.constant 0 : index
    %c0_3 = arith.constant 0 : index
    %4 = vector.load %arg2[%c0_2, %c0_3] : memref<128x128xbf16, #tpu.memory_space<vmem>>, vector<128x128xbf16>
    %c0_4 = arith.constant 0 : index
    %c0_5 = arith.constant 0 : index
    %5 = vector.load %arg3[%c0_4, %c0_5] : memref<128x128xbf16, #tpu.memory_space<vmem>>, vector<128x128xbf16>
    %cst = arith.constant dense<0.000000e+00> : vector<128x128xf32>
    %6 = tpu.matmul %4, %5, %cst {dimension_numbers = #tpu.dot_dimension_numbers<[1], [0], [0], [1], [0, 0, 1, 1], [], []>} : vector<128x128xbf16>, vector<128x128xbf16>, vector<128x128xf32> -> vector<128x128xf32>
    %7 = arith.addf %3, %6 : vector<128x128xf32>
    %c0_6 = arith.constant 0 : index
    %c0_7 = arith.constant 0 : index
    %8 = vector.load %arg5[%c0_6, %c0_7] : memref<128x128xf32, #tpu.memory_space<vmem>>, vector<128x128xf32>
    tpu.vector_store %arg5[%c0_6, %c0_7], %7 {strides = array<i32>} : memref<128x128xf32, #tpu.memory_space<vmem>>, vector<128x128xf32>,
    %c0_i32_8 = arith.constant 0 : i32
    %9 = arith.cmpi eq, %arg1, %c0_i32_8 : i32
    %10 = arith.extui %9 : i1 to i32
    %c0_i32_9 = arith.constant 0 : i32
    %11 = arith.cmpi ne, %10, %c0_i32_9 : i32
    scf.if %11 {
      %c0_10 = arith.constant 0 : index
      %c0_11 = arith.constant 0 : index
      %12 = vector.load %arg5[%c0_10, %c0_11] : memref<128x128xf32, #tpu.memory_space<vmem>>, vector<128x128xf32>
      %13 = arith.truncf %12 : vector<128x128xf32> to vector<128x128xbf16>
      %c0_12 = arith.constant 0 : index
      %c0_13 = arith.constant 0 : index
      %14 = vector.load %arg4[%c0_12, %c0_13] : memref<128x128xbf16, #tpu.memory_space<vmem>>, vector<128x128xbf16>
      tpu.vector_store %arg4[%c0_12, %c0_13], %13 {strides = array<i32>} : memref<128x128xbf16, #tpu.memory_space<vmem>>, vector<128x128xbf16>,
    } else {
    }
    return
  }
  func.func @transform_0(%arg0: i32, %arg1: i32) -> (i32, i32) {
    %c0_i32 = arith.constant 0 : i32
    return %arg0, %arg1 : i32, i32
  }
  func.func @transform_1(%arg0: i32, %arg1: i32) -> (i32, i32) {
    %c0_i32 = arith.constant 0 : i32
    %c0_i32_0 = arith.constant 0 : i32
    return %arg1, %c0_i32 : i32, i32
  }
  func.func @transform_2(%arg0: i32, %arg1: i32) -> (i32, i32) {
    %c0_i32 = arith.constant 0 : i32
    %c0_i32_0 = arith.constant 0 : i32
    return %arg0, %c0_i32 : i32, i32
  }
}

</mosaic_0001>

<bundles_post_ra>
// kernel: graph_convolution.3
= control target key start
LH: loop header
LB: loop body
LE: loop exit
PB: predicated region body
PF: predicated region fallthrough
CT: control target
= control target key end

     0   :  { %s977_s12 = smov 0   ;;  %s979_s13 = smov 0   ;;  %s1130_s0 = inlined_call_operand.vmem [shape: bf16[384,384], index: 0, kind: input, shape index: {}]   ;;  %s1131_s1 = inlined_call_operand.vmem [shape: bf16[384,128], index: 1, kind: input, shape index: {}]   ;;  %s1132_s2 = inlined_call_operand.vmem [shape: f32[1,128], index: 2, kind: input, shape index: {}]   ;;  %s1133_s3 = inlined_call_operand.vmem [shape: f32[384,128], index: 3, kind: output, shape index: {}]  }
   0x1   :  { %s981_s14 = smov 0   ;;  %s983_s15 = smov 0  }
   0x2   :  { %s985_s16 = smov 0   ;;  %s987_s17 = smov 0  }
   0x3   :  { %s989_s18 = smov 0  }
   0x4 LB: > { %s22_s19 = sadd.s32 1, %s946_s16  ;;  %s25_s20 = sadd.s32 1, %s950_s17  ;;  %s954_s18 = sphi %s989_s18, %s13_s18   ;;  %s950_s17 = sphi %s987_s17, %s1139_s17   ;;  %s946_s16 = sphi %s985_s16, %s1138_s16   ;;  %s942_s15 = sphi %s983_s15, %s1137_s15   ;;  %s938_s14 = sphi %s981_s14, %s1136_s14   ;;  %s934_s13 = sphi %s979_s13, %s1135_s13   ;;  %s930_s12 = sphi %s977_s12, %s1134_s12  }
   0x5   : > { %p23_p0 = scmp.ge.s32.totalorder %s22_s19, 3  ;;  %p41_p1 = scmp.ne.s32.totalorder %s934_s13, %s930_s12 }
   0x6   : > { %p42_p2 = scmp.eq.s32.totalorder %s954_s18, 0  ;;  %s34_s24 = sadd.s32 1, %s934_s13 }
   0x7   : > { %s1141_s19 = smov (%p23_p0, %s22_s19), 0  ;;  %s1143_s20 = smov (!%p23_p0, %s25_s20), %s950_s17 }
   0x8   : > { %p43_p3 = por %p42_p2, %p41_p1  ;;  %p27_p4 = scmp.ge.s32.totalorder %s1143_s20, 3 }
   0x9   : > { %s30_s21 = ssub.s32 %s946_s16, %s1141_s19  ;;  %p730_p6 = scmp.ge.s32.totalorder %s954_s18, 9 }
   0xa   : > { %s1145_s20 = smov (%p27_p4, %s1143_s20), 0 }
   0xb   : > { %s29_s22 = ssub.s32 %s950_s17, %s1145_s20  ;;  %141 = sbr.rel (%p730_p6) target bundleno = 35 (0x23), region = 24 }
   0xc   : > { %s31_s23 = sor.u32 %s30_s21, %s29_s22 }
   0xd   : > { %p32_p5 = scmp.eq.s32.totalorder %s31_s23, 0 }
   0xf   : > { %s1028_s25 = scalar_select %p32_p5, %s934_s13, %s34_s24  }
  0x12   : > { %144 = sbr.rel (!%p43_p3) target bundleno = 35 (0x23), region = 28  ;;  %s146_s26 = sand.u32 (%p43_p3), 1, %s934_s13  }
  0x13   : > { %s826_s27 = smul.u32 (%p43_p3), 48, %s950_s17  ;;  %s731_s28 = sshll.u32 (%p43_p3), %s146_s26, 6 }
  0x14   : > { %s148_s7 = scalar_lea.vmem (%p43_p3), [#allocation3], %s731_s28 }
  0x15   : > { %s151_s29 = sadd.s32 (%p43_p3), %s946_s16, %s826_s27 }
  0x16   : > { %s734_s30 = sshll.u32 (%p43_p3), %s151_s29, 2 }
  0x17   : > { %s1037_s6 = scalar_lea.vmem (%p43_p3), %s1130_s0, %s734_s30 }
  0x18   : > { %v169_v0 = vld [vmem:[%s1037_s6] sm:$0xf] (%p43_p3)  ;;  %v171_v1 = vld [vmem:[%s1037_s6 + $0xc] sm:$0xf] (%p43_p3)  ;;  %v173_v2 = vld [vmem:[%s1037_s6 + $0x18] sm:$0xf] (%p43_p3) }
  0x19   : > { %170 = vst [vmem:[%s148_s7] sm:$0xf] %v169_v0  ;;  %172 = vst [vmem:[%s148_s7 + $0x4] sm:$0xf] %v171_v1  ;;  %v175_v3 = vld [vmem:[%s1037_s6 + $0x24] sm:$0xf] }
  0x1a   : > { %174 = vst [vmem:[%s148_s7 + $0x8] sm:$0xf] %v173_v2  ;;  %v177_v4 = vld [vmem:[%s1037_s6 + $0x30] sm:$0xf]  ;;  %v179_v5 = vld [vmem:[%s1037_s6 + $0x3c] sm:$0xf] }
  0x1b   : > { %176 = vst [vmem:[%s148_s7 + $0xc] sm:$0xf] %v175_v3  ;;  %178 = vst [vmem:[%s148_s7 + $0x10] sm:$0xf] %v177_v4  ;;  %v181_v6 = vld [vmem:[%s1037_s6 + $0x48] sm:$0xf] }
  0x1c   : > { %180 = vst [vmem:[%s148_s7 + $0x14] sm:$0xf] %v179_v5  ;;  %v183_v7 = vld [vmem:[%s1037_s6 + $0x54] sm:$0xf]  ;;  %v185_v8 = vld [vmem:[%s1037_s6 + $0x60] sm:$0xf] }
  0x1d   : > { %182 = vst [vmem:[%s148_s7 + $0x18] sm:$0xf] %v181_v6  ;;  %184 = vst [vmem:[%s148_s7 + $0x1c] sm:$0xf] %v183_v7  ;;  %v187_v9 = vld [vmem:[%s1037_s6 + $0x6c] sm:$0xf] }
  0x1e   : > { %186 = vst [vmem:[%s148_s7 + $0x20] sm:$0xf] %v185_v8  ;;  %v189_v10 = vld [vmem:[%s1037_s6 + $0x78] sm:$0xf]  ;;  %v191_v11 = vld [vmem:[%s1037_s6 + $0x84] sm:$0xf] }
  0x1f   : > { %188 = vst [vmem:[%s148_s7 + $0x24] sm:$0xf] %v187_v9  ;;  %190 = vst [vmem:[%s148_s7 + $0x28] sm:$0xf] %v189_v10  ;;  %v193_v12 = vld [vmem:[%s1037_s6 + $0x90] sm:$0xf] }
  0x20   : > { %192 = vst [vmem:[%s148_s7 + $0x2c] sm:$0xf] %v191_v11  ;;  %v195_v13 = vld [vmem:[%s1037_s6 + $0x9c] sm:$0xf]  ;;  %v197_v14 = vld [vmem:[%s1037_s6 + $0xa8] sm:$0xf] }
  0x21   : > { %194 = vst [vmem:[%s148_s7 + $0x30] sm:$0xf] %v193_v12  ;;  %196 = vst [vmem:[%s148_s7 + $0x34] sm:$0xf] %v195_v13  ;;  %v199_v15 = vld [vmem:[%s1037_s6 + $0xb4] sm:$0xf] }
  0x22   : > { %198 = vst [vmem:[%s148_s7 + $0x38] sm:$0xf] %v197_v14  ;;  %200 = vst [vmem:[%s148_s7 + $0x3c] sm:$0xf] %v199_v15 }
  0x23 PF: > { %p735_p7 = scmp.ge.s32.totalorder %s954_s18, 1  ;;  %p254_p8 = scmp.lt.s32.totalorder %s954_s18, 10 }
  0x25   : > { %p255_p9 = pnand %p735_p7, %p254_p8 }
  0x26   : > { %s261_s8 = sand.u32 (!%p255_p9), 1, %s930_s12   ;;  %s737_s9 = sshll.u32 (!%p255_p9), %s942_s15, 4 }
  0x27   : > { %258 = sbr.rel (%p255_p9) target bundleno = 330 (0x14a), region = 69  ;;  %s736_s10 = sshll.u32 (!%p255_p9), %s261_s8, 6 }
  0x28   : > { %p286_p10 = scmp.lt.s32.totalorder (!%p255_p9), %s737_s9, 47  ;;  %s1064_s24 = scalar_lea.vmem (!%p255_p9), [#allocation3], %s736_s10 }
  0x29   : > { %p739_p11 = scmp.ne.s32.totalorder (!%p255_p9), %s938_s14, 0 }
  0x2e   : > { %s1147_s9 = smov (!%p286_p10, %s737_s9), 47  ;;  %295 = sbr.rel (%p739_p11) target bundleno = 56 (0x38), region = 77 }
  0x2f   : > { %s738_s11 = sshll.u32 %s1147_s9, 3  ;;  %v956_v16 = vmov (!%p739_p11), 0.0  }
  0x30   : > { %s1062_s23 = scalar_lea.vmem %s1133_s3, %s738_s11  ;;  %296 = vst [vmem:[#allocation2] sm:$0xff] (!%p739_p11), %v956_v16  ;;  %297 = vst [vmem:[#allocation2 + $0x8] sm:$0xff] (!%p739_p11), %v956_v16 }
  0x31   : > { %298 = vst [vmem:[#allocation2 + $0x10] sm:$0xff] (!%p739_p11), %v956_v16  ;;  %299 = vst [vmem:[#allocation2 + $0x18] sm:$0xff] (!%p739_p11), %v956_v16 }
  0x32   : > { %300 = vst [vmem:[#allocation2 + $0x20] sm:$0xff] (!%p739_p11), %v956_v16  ;;  %301 = vst [vmem:[#allocation2 + $0x28] sm:$0xff] (!%p739_p11), %v956_v16 }
  0x33   : > { %302 = vst [vmem:[#allocation2 + $0x30] sm:$0xff] (!%p739_p11), %v956_v16  ;;  %303 = vst [vmem:[#allocation2 + $0x38] sm:$0xff] (!%p739_p11), %v956_v16 }
  0x34   : > { %304 = vst [vmem:[#allocation2 + $0x40] sm:$0xff] (!%p739_p11), %v956_v16  ;;  %305 = vst [vmem:[#allocation2 + $0x48] sm:$0xff] (!%p739_p11), %v956_v16 }
  0x35   : > { %306 = vst [vmem:[#allocation2 + $0x50] sm:$0xff] %v956_v16  ;;  %307 = vst [vmem:[#allocation2 + $0x58] sm:$0xff] %v956_v16 }
  0x36   : > { %308 = vst [vmem:[#allocation2 + $0x60] sm:$0xff] %v956_v16  ;;  %309 = vst [vmem:[#allocation2 + $0x68] sm:$0xff] %v956_v16 }
  0x37   : > { %310 = vst [vmem:[#allocation2 + $0x70] sm:$0xff] %v956_v16  ;;  %311 = vst [vmem:[#allocation2 + $0x78] sm:$0xff] %v956_v16 }
  0x38 PF: > { %s740_s12 = sshll.u32 %s938_s14, 7  ;;  %v892_v17 = vld [vmem:[%s1064_s24] sm:$0xff]   ;;  %v894_v27 = vld [vmem:[%s1064_s24 + $0x8] sm:$0xff]   ;;  %v896_v29 = vld [vmem:[%s1064_s24 + $0x10] sm:$0xff]   ;;  %p758_p12 = scmp.ne.s32.totalorder %s938_s14, 2 }
  0x39   : > { %s313_s15 = sshra.s32 %s740_s12, 3  ;;  %v893_v18 = vld [vmem:[%s1064_s24 + $0x20] sm:$0xff]   ;;  %794 = vmatprep.mubr.bf16.mxu0 %v892_v17  ;;  %v895_v28 = vld [vmem:[%s1064_s24 + $0x28] sm:$0xff]   ;;  %v897_v30 = vld [vmem:[%s1064_s24 + $0x30] sm:$0xff]  }
  0x3a   : > { %s741_s26 = sshll.u32 %s313_s15, 2  ;;  %802 = vmatprep.mubr.bf16.mxu1 %v893_v18  ;;  %v898_v31 = vld [vmem:[%s1064_s24 + $0x18] sm:$0xff]   ;;  %v333_v35 = vld [vmem:[#allocation2] sm:$0xff]  ;;  %v334_v45 = vld [vmem:[#allocation2 + $0x8] sm:$0xff] }
  0x3b   : > { %s1073_s29 = scalar_lea.vmem %s1131_s1, %s741_s26  ;;  %v899_v32 = vld [vmem:[%s1064_s24 + $0x38] sm:$0xff]   ;;  %v335_v33 = vld [vmem:[#allocation2 + $0x10] sm:$0xff]  ;;  %v759_v18 = vld [vmem:[%s1132_s2] ss:$0 sm:$0xff] (!%p758_p12) }
  0x3c   : > { %v884_v19 = vld [vmem:[%s1073_s29] sm:$0xff]   ;;  %v885_v20 = vld [vmem:[%s1073_s29 + $0x8] sm:$0xff]   ;;  %v886_v21 = vld [vmem:[%s1073_s29 + $0x10] sm:$0xff]  }
  0x3d   : > { %778 = vmatprep.subr.bf16.mxu0 %v884_v19  ;;  %810 = vmatprep.subr.bf16.mxu1 %v884_v19  ;;  %v887_v22 = vld [vmem:[%s1073_s29 + $0x18] sm:$0xff]   ;;  %v888_v23 = vld [vmem:[%s1073_s29 + $0x20] sm:$0xff]   ;;  %v889_v24 = vld [vmem:[%s1073_s29 + $0x28] sm:$0xff]  }
  0x3e   : > { %779 = vmatpush3.bf16.msra.mxu0 %v884_v19  ;;  %818 = vmatpush3.bf16.msra.mxu1 %v884_v19  ;;  %v890_v25 = vld [vmem:[%s1073_s29 + $0x30] sm:$0xff]   ;;  %v891_v26 = vld [vmem:[%s1073_s29 + $0x38] sm:$0xff]   ;;  %v341_v36 = vld [vmem:[#allocation2 + $0x40] sm:$0xff] }
  0x3f   : > { %780 = vmatprep.subr.bf16.mxu0 %v885_v20  ;;  %811 = vmatprep.subr.bf16.mxu1 %v885_v20  ;;  %v343_v34 = vld [vmem:[#allocation2 + $0x50] sm:$0xff]  ;;  %v336_v39 = vld [vmem:[#allocation2 + $0x18] sm:$0xff]  ;;  %v342_v46 = vld [vmem:[#allocation2 + $0x48] sm:$0xff] }
  0x40   : > { %v344_v40 = vld [vmem:[#allocation2 + $0x58] sm:$0xff]  ;;  %v339_v57 = vld [vmem:[#allocation2 + $0x30] sm:$0xff]  ;;  %v337_v59 = vld [vmem:[#allocation2 + $0x20] sm:$0xff] }
  0x41   : > { %v347_v58 = vld [vmem:[#allocation2 + $0x70] sm:$0xff]  ;;  %v345_v60 = vld [vmem:[#allocation2 + $0x60] sm:$0xff]  ;;  %v340_v63 = vld [vmem:[#allocation2 + $0x38] sm:$0xff] }
  0x42   : > { %781 = vmatpush3.bf16.msra.mxu0 %v885_v20  ;;  %819 = vmatpush3.bf16.msra.mxu1 %v885_v20  ;;  %v348_v0 = vld [vmem:[#allocation2 + $0x78] sm:$0xff]  ;;  %v338_v5 = vld [vmem:[#allocation2 + $0x28] sm:$0xff] }
  0x43   : > { %782 = vmatprep.subr.bf16.mxu0 %v886_v21  ;;  %812 = vmatprep.subr.bf16.mxu1 %v886_v21  ;;  %v346_v6 = vld [vmem:[#allocation2 + $0x68] sm:$0xff] }
  0x46   : > { %783 = vmatpush3.bf16.msra.mxu0 %v886_v21  ;;  %820 = vmatpush3.bf16.msra.mxu1 %v886_v21 }
  0x47   : > { %784 = vmatprep.subr.bf16.mxu0 %v887_v22  ;;  %813 = vmatprep.subr.bf16.mxu1 %v887_v22 }
  0x4a   : > { %785 = vmatpush3.bf16.msra.mxu0 %v887_v22  ;;  %821 = vmatpush3.bf16.msra.mxu1 %v887_v22 }
  0x4b   : > { %786 = vmatprep.subr.bf16.mxu0 %v888_v23  ;;  %814 = vmatprep.subr.bf16.mxu1 %v888_v23 }
  0x4e   : > { %787 = vmatpush3.bf16.msra.mxu0 %v888_v23  ;;  %822 = vmatpush3.bf16.msra.mxu1 %v888_v23 }
  0x4f   : > { %788 = vmatprep.subr.bf16.mxu0 %v889_v24  ;;  %815 = vmatprep.subr.bf16.mxu1 %v889_v24 }
  0x52   : > { %789 = vmatpush3.bf16.msra.mxu0 %v889_v24  ;;  %823 = vmatpush3.bf16.msra.mxu1 %v889_v24 }
  0x53   : > { %790 = vmatprep.subr.bf16.mxu0 %v890_v25  ;;  %816 = vmatprep.subr.bf16.mxu1 %v890_v25 }
  0x56   : > { %791 = vmatpush3.bf16.msra.mxu0 %v890_v25  ;;  %824 = vmatpush3.bf16.msra.mxu1 %v890_v25 }
  0x57   : > { %792 = vmatprep.subr.bf16.mxu0 %v891_v26  ;;  %817 = vmatprep.subr.bf16.mxu1 %v891_v26 }
  0x5a   : > { %793 = vmatpush3.bf16.msra.mxu0 %v891_v26  ;;  %825 = vmatpush3.bf16.msra.mxu1 %v891_v26 }
  0x5d   : > { %795 = vmatmul.mubr.bf16.vlgmr.msra.gmra.mrb[0].mxu0 %v894_v27  ;;  %803 = vmatmul.mubr.bf16.vlgmr.msra.gmra.mrb[0].mxu1 %v895_v28 }
  0x5e   : > { %798 = vmatprep.mubr.bf16.mxu0 %v896_v29  ;;  %806 = vmatprep.mubr.bf16.mxu1 %v897_v30 }
  0x65   : > { %799 = vmatmul.mubr.bf16.gmra.mrb[4].mxu0 %v898_v31  ;;  %807 = vmatmul.mubr.bf16.gmra.mrb[4].mxu1 %v899_v32 }
 0x130   : > { %v796_v37 = vpop.f32.mrb[0].mxu0  ;;  %v804_v38 = vpop.f32.mrb[0].mxu1 }
 0x131   : > { %v560_v41 = vadd.f32 %v796_v37, %v335_v33  ;;  %v568_v42 = vadd.f32 %v804_v38, %v343_v34  ;;  %v495_v43 = vpop.f32.mrb[1].mxu0  ;;  %v527_v44 = vpop.f32.mrb[1].mxu1 }
 0x132   : > { %v558_v47 = vadd.f32 %v495_v43, %v333_v35  ;;  %v566_v48 = vadd.f32 %v527_v44, %v341_v36  ;;  %v797_v49 = vpop.f32.mrb[2].mxu0  ;;  %v805_v50 = vpop.f32.mrb[2].mxu1 }
 0x133   : > { %576 = vst [vmem:[#allocation2 + $0x10] sm:$0xff] %v560_v41  ;;  %584 = vst [vmem:[#allocation2 + $0x50] sm:$0xff] %v568_v42  ;;  %v561_v51 = vadd.f32 %v797_v49, %v336_v39  ;;  %v569_v52 = vadd.f32 %v805_v50, %v344_v40  ;;  %v498_v53 = vpop.f32.mrb[3].mxu0  ;;  %v530_v54 = vpop.f32.mrb[3].mxu1 }
 0x134   : > { %574 = vst [vmem:[#allocation2] sm:$0xff] %v558_v47  ;;  %582 = vst [vmem:[#allocation2 + $0x40] sm:$0xff] %v566_v48  ;;  %v559_v55 = vadd.f32 %v498_v53, %v334_v45  ;;  %v567_v56 = vadd.f32 %v530_v54, %v342_v46 }
 0x135   : > { %577 = vst [vmem:[#allocation2 + $0x18] sm:$0xff] %v561_v51  ;;  %585 = vst [vmem:[#allocation2 + $0x58] sm:$0xff] %v569_v52 }
 0x136   : > { %575 = vst [vmem:[#allocation2 + $0x8] sm:$0xff] %v559_v55  ;;  %583 = vst [vmem:[#allocation2 + $0x48] sm:$0xff] %v567_v56 }
 0x138   : > { %v800_v61 = vpop.f32.mrb[4].mxu0  ;;  %v808_v62 = vpop.f32.mrb[4].mxu1  ;;  %593 = sbr.rel (%p758_p12) target bundleno = 330 (0x14a), region = 81 }
 0x139   : > { %v564_v1 = vadd.f32 %v800_v61, %v339_v57  ;;  %v572_v2 = vadd.f32 %v808_v62, %v347_v58  ;;  %v511_v3 = vpop.f32.mrb[5].mxu0  ;;  %v543_v4 = vpop.f32.mrb[5].mxu1 }
 0x13a   : > { %v562_v7 = vadd.f32 %v511_v3, %v337_v59  ;;  %v570_v8 = vadd.f32 %v543_v4, %v345_v60  ;;  %v801_v9 = vpop.f32.mrb[6].mxu0  ;;  %v809_v10 = vpop.f32.mrb[6].mxu1  ;;  %v596_v22 = vld [vmem:[#allocation2 + $0x10] sm:$0xff] (!%p758_p12) }
 0x13b   : > { %580 = vst [vmem:[#allocation2 + $0x30] sm:$0xff] %v564_v1  ;;  %588 = vst [vmem:[#allocation2 + $0x70] sm:$0xff] %v572_v2  ;;  %v565_v11 = vadd.f32 %v801_v9, %v340_v63  ;;  %v573_v12 = vadd.f32 %v809_v10, %v348_v0  ;;  %v514_v13 = vpop.f32.mrb[7].mxu0  ;;  %v546_v14 = vpop.f32.mrb[7].mxu1  ;;  %v594_v17 = vld [vmem:[#allocation2] sm:$0xff] (!%p758_p12)  ;;  %v619_v25 = vadd.f32 (!%p758_p12), %v759_v18, %v596_v22  ;;  %v604_v36 = vld [vmem:[#allocation2 + $0x50] sm:$0xff] (!%p758_p12) }
 0x13c   : > { %578 = vst [vmem:[#allocation2 + $0x20] sm:$0xff] %v562_v7  ;;  %586 = vst [vmem:[#allocation2 + $0x60] sm:$0xff] %v570_v8  ;;  %v563_v15 = vadd.f32 %v514_v13, %v338_v5  ;;  %v571_v16 = vadd.f32 %v546_v14, %v346_v6  ;;  %v617_v20 = vadd.f32 (!%p758_p12), %v759_v18, %v594_v17  ;;  %v597_v23 = vld [vmem:[#allocation2 + $0x18] sm:$0xff] (!%p758_p12)  ;;  %v602_v34 = vld [vmem:[#allocation2 + $0x40] sm:$0xff] (!%p758_p12) }
 0x13d   : > { %581 = vst [vmem:[#allocation2 + $0x38] sm:$0xff] %v565_v11  ;;  %589 = vst [vmem:[#allocation2 + $0x78] sm:$0xff] %v573_v12  ;;  %v595_v19 = vld [vmem:[#allocation2 + $0x8] sm:$0xff] (!%p758_p12)  ;;  %v620_v26 = vadd.f32 (!%p758_p12), %v759_v18, %v597_v23  ;;  %v625_v37 = vadd.f32 (!%p758_p12), %v759_v18, %v602_v34  ;;  %v627_v39 = vadd.f32 (!%p758_p12), %v759_v18, %v604_v36  ;;  %v605_v40 = vld [vmem:[#allocation2 + $0x58] sm:$0xff] (!%p758_p12) }
 0x13e   : > { %579 = vst [vmem:[#allocation2 + $0x28] sm:$0xff] %v563_v15  ;;  %587 = vst [vmem:[#allocation2 + $0x68] sm:$0xff] %v571_v16  ;;  %v618_v21 = vadd.f32 (!%p758_p12), %v759_v18, %v595_v19  ;;  %v603_v35 = vld [vmem:[#allocation2 + $0x48] sm:$0xff] (!%p758_p12)  ;;  %v628_v43 = vadd.f32 (!%p758_p12), %v759_v18, %v605_v40 }
 0x13f   : > { %633 = vst [vmem:[%s1062_s23] sm:$0xff] %v617_v20  ;;  %635 = vst [vmem:[%s1062_s23 + $0x10] sm:$0xff] %v619_v25  ;;  %v626_v38 = vadd.f32 %v759_v18, %v603_v35 }
 0x140   : > { %634 = vst [vmem:[%s1062_s23 + $0x8] sm:$0xff] %v618_v21  ;;  %636 = vst [vmem:[%s1062_s23 + $0x18] sm:$0xff] %v620_v26 }
 0x141   : > { %641 = vst [vmem:[%s1062_s23 + $0x40] sm:$0xff] %v625_v37  ;;  %642 = vst [vmem:[%s1062_s23 + $0x48] sm:$0xff] %v626_v38 }
 0x142   : > { %v600_v29 = vld [vmem:[#allocation2 + $0x30] sm:$0xff]  ;;  %643 = vst [vmem:[%s1062_s23 + $0x50] sm:$0xff] %v627_v39  ;;  %644 = vst [vmem:[%s1062_s23 + $0x58] sm:$0xff] %v628_v43 }
 0x143   : > { %v598_v24 = vld [vmem:[#allocation2 + $0x20] sm:$0xff]  ;;  %v623_v32 = vadd.f32 %v759_v18, %v600_v29  ;;  %v608_v46 = vld [vmem:[#allocation2 + $0x70] sm:$0xff] }
 0x144   : > { %v621_v27 = vadd.f32 %v759_v18, %v598_v24  ;;  %v601_v30 = vld [vmem:[#allocation2 + $0x38] sm:$0xff]  ;;  %v606_v41 = vld [vmem:[#allocation2 + $0x60] sm:$0xff]  ;;  %v631_v48 = vadd.f32 %v759_v18, %v608_v46 }
 0x145   : > { %v599_v28 = vld [vmem:[#allocation2 + $0x28] sm:$0xff]  ;;  %v624_v33 = vadd.f32 %v759_v18, %v601_v30  ;;  %639 = vst [vmem:[%s1062_s23 + $0x30] sm:$0xff] %v623_v32  ;;  %v629_v44 = vadd.f32 %v759_v18, %v606_v41  ;;  %v609_v47 = vld [vmem:[#allocation2 + $0x78] sm:$0xff] }
 0x146   : > { %v622_v31 = vadd.f32 %v759_v18, %v599_v28  ;;  %637 = vst [vmem:[%s1062_s23 + $0x20] sm:$0xff] %v621_v27  ;;  %v607_v42 = vld [vmem:[#allocation2 + $0x68] sm:$0xff]  ;;  %v632_v49 = vadd.f32 %v759_v18, %v609_v47  ;;  %647 = vst [vmem:[%s1062_s23 + $0x70] sm:$0xff] %v631_v48 }
 0x147   : > { %640 = vst [vmem:[%s1062_s23 + $0x38] sm:$0xff] %v624_v33  ;;  %v630_v45 = vadd.f32 %v759_v18, %v607_v42  ;;  %645 = vst [vmem:[%s1062_s23 + $0x60] sm:$0xff] %v629_v44 }
 0x148   : > { %638 = vst [vmem:[%s1062_s23 + $0x28] sm:$0xff] %v622_v31  ;;  %648 = vst [vmem:[%s1062_s23 + $0x78] sm:$0xff] %v632_v49 }
 0x149   : > { %646 = vst [vmem:[%s1062_s23 + $0x68] sm:$0xff] %v630_v45 }
 0x14a PF: > { %s13_s18 = sadd.s32 1, %s954_s18   ;;  %s1134_s12 = smov %s934_s13 }
 0x14b   : > { %p10_p13 = scmp.ge.s32.totalorder %s13_s18, 11   ;;  %s1135_s13 = smov %s1028_s25 }
 0x14c   : > { %s1136_s14 = smov %s946_s16  ;;  %s1137_s15 = smov %s950_s17 }
 0x14d   : > { %s1138_s16 = smov %s1141_s19  ;;  %s1139_s17 = smov %s1145_s20 }
 0x14e   :  { %12 = sbr.rel (!%p10_p13) target bundleno = 4 (0x4), region = 117 }

// kernel: graph_convolution.2
= control target key start
LH: loop header
LB: loop body
LE: loop exit
PB: predicated region body
PF: predicated region fallthrough
CT: control target
= control target key end

     0   :  { %s918_s9 = smov 0   ;;  %s920_s10 = smov 0   ;;  %s992_s0 = inlined_call_operand.vmem [shape: bf16[384,128], index: 0, kind: input, shape index: {}]   ;;  %s993_s1 = inlined_call_operand.vmem [shape: bf16[128,128], index: 1, kind: input, shape index: {}]   ;;  %s994_s2 = inlined_call_operand.vmem [shape: bf16[384,128], index: 2, kind: output, shape index: {}]  }
   0x1   :  { %s922_s11 = smov 0  }
   0x2 LB: > { %s24_s12 = sadd.s32 1, %s897_s10  ;;  %p673_p0 = scmp.ge.s32.totalorder %s901_s11, 1  ;;  %s901_s11 = sphi %s922_s11, %s12_s11   ;;  %s897_s10 = sphi %s920_s10, %s996_s10   ;;  %s893_s9 = sphi %s918_s9, %s995_s9  }
   0x3   : > { %p26_p1 = scmp.ge.s32.totalorder %s24_s12, 3  ;;  %p141_p2 = scmp.lt.s32.totalorder %s901_s11, 4 }
   0x5   : > { %s998_s12 = smov (%p26_p1, %s24_s12), 0  ;;  %p142_p3 = pnand %p673_p0, %p141_p2 }
   0x6   : > { %v863_v0 = vld [vmem:[%s993_s1] sm:$0xff] (!%p142_p3)   ;;  %s674_s15 = sshll.u32 (!%p142_p3), %s893_s9, 4  ;;  %v864_v1 = vld [vmem:[%s993_s1 + $0x8] sm:$0xff] (!%p142_p3)   ;;  %v865_v2 = vld [vmem:[%s993_s1 + $0x10] sm:$0xff] (!%p142_p3)  }
   0x7   : > { %145 = sbr.rel (%p142_p3) target bundleno = 265 (0x109), region = 28  ;;  %p172_p4 = scmp.lt.s32.totalorder (!%p142_p3), %s674_s15, 47  ;;  %791 = vmatprep.subr.bf16.mxu0 (!%p142_p3), %v863_v0  ;;  %823 = vmatprep.subr.bf16.mxu1 (!%p142_p3), %v863_v0  ;;  %v866_v3 = vld [vmem:[%s993_s1 + $0x18] sm:$0xff] (!%p142_p3)   ;;  %v867_v6 = vld [vmem:[%s993_s1 + $0x20] sm:$0xff] (!%p142_p3)   ;;  %v868_v7 = vld [vmem:[%s993_s1 + $0x28] sm:$0xff] (!%p142_p3)  }
   0x8   : > { %792 = vmatpush3.bf16.msra.mxu0 (!%p142_p3), %v863_v0  ;;  %831 = vmatpush3.bf16.msra.mxu1 (!%p142_p3), %v863_v0  ;;  %v869_v8 = vld [vmem:[%s993_s1 + $0x30] sm:$0xff] (!%p142_p3)   ;;  %v870_v9 = vld [vmem:[%s993_s1 + $0x38] sm:$0xff] (!%p142_p3)  }
   0x9   : > { %793 = vmatprep.subr.bf16.mxu0 (!%p142_p3), %v864_v1  ;;  %824 = vmatprep.subr.bf16.mxu1 (!%p142_p3), %v864_v1 }
   0xc   : > { %794 = vmatpush3.bf16.msra.mxu0 (!%p142_p3), %v864_v1  ;;  %832 = vmatpush3.bf16.msra.mxu1 (!%p142_p3), %v864_v1 }
   0xd   : > { %795 = vmatprep.subr.bf16.mxu0 (!%p142_p3), %v865_v2  ;;  %825 = vmatprep.subr.bf16.mxu1 (!%p142_p3), %v865_v2 }
   0xe   : > { %s1000_s15 = smov (!%p172_p4, %s674_s15), 47 }
   0xf   : > { %s675_s20 = sshll.u32 %s1000_s15, 2 }
  0x10   : > { %s953_s23 = scalar_lea.vmem %s992_s0, %s675_s20  ;;  %796 = vmatpush3.bf16.msra.mxu0 %v865_v2  ;;  %833 = vmatpush3.bf16.msra.mxu1 %v865_v2  ;;  %s190_s8 = scalar_lea.vmem %s994_s2, %s675_s20 }
  0x11   : > { %v871_v4 = vld [vmem:[%s953_s23] sm:$0xff]   ;;  %797 = vmatprep.subr.bf16.mxu0 %v866_v3  ;;  %826 = vmatprep.subr.bf16.mxu1 %v866_v3  ;;  %v873_v10 = vld [vmem:[%s953_s23 + $0x8] sm:$0xff]   ;;  %v875_v12 = vld [vmem:[%s953_s23 + $0x10] sm:$0xff]  }
  0x12   : > { %v872_v5 = vld [vmem:[%s953_s23 + $0x20] sm:$0xff]   ;;  %807 = vmatprep.mubr.bf16.mxu0 %v871_v4  ;;  %v874_v11 = vld [vmem:[%s953_s23 + $0x28] sm:$0xff]   ;;  %v876_v13 = vld [vmem:[%s953_s23 + $0x30] sm:$0xff]  }
  0x13   : > { %815 = vmatprep.mubr.bf16.mxu1 %v872_v5  ;;  %v877_v14 = vld [vmem:[%s953_s23 + $0x18] sm:$0xff]  }
  0x14   : > { %798 = vmatpush3.bf16.msra.mxu0 %v866_v3  ;;  %834 = vmatpush3.bf16.msra.mxu1 %v866_v3  ;;  %v878_v15 = vld [vmem:[%s953_s23 + $0x38] sm:$0xff]  }
  0x15   : > { %799 = vmatprep.subr.bf16.mxu0 %v867_v6  ;;  %827 = vmatprep.subr.bf16.mxu1 %v867_v6 }
  0x18   : > { %800 = vmatpush3.bf16.msra.mxu0 %v867_v6  ;;  %835 = vmatpush3.bf16.msra.mxu1 %v867_v6 }
  0x19   : > { %801 = vmatprep.subr.bf16.mxu0 %v868_v7  ;;  %828 = vmatprep.subr.bf16.mxu1 %v868_v7 }
  0x1c   : > { %802 = vmatpush3.bf16.msra.mxu0 %v868_v7  ;;  %836 = vmatpush3.bf16.msra.mxu1 %v868_v7 }
  0x1d   : > { %803 = vmatprep.subr.bf16.mxu0 %v869_v8  ;;  %829 = vmatprep.subr.bf16.mxu1 %v869_v8 }
  0x20   : > { %804 = vmatpush3.bf16.msra.mxu0 %v869_v8  ;;  %837 = vmatpush3.bf16.msra.mxu1 %v869_v8 }
  0x21   : > { %805 = vmatprep.subr.bf16.mxu0 %v870_v9  ;;  %830 = vmatprep.subr.bf16.mxu1 %v870_v9 }
  0x24   : > { %806 = vmatpush3.bf16.msra.mxu0 %v870_v9  ;;  %838 = vmatpush3.bf16.msra.mxu1 %v870_v9 }
  0x27   : > { %808 = vmatmul.mubr.bf16.vlgmr.msra.gmra.mrb[0].mxu0 %v873_v10  ;;  %816 = vmatmul.mubr.bf16.vlgmr.msra.gmra.mrb[0].mxu1 %v874_v11 }
  0x28   : > { %811 = vmatprep.mubr.bf16.mxu0 %v875_v12  ;;  %819 = vmatprep.mubr.bf16.mxu1 %v876_v13 }
  0x2f   : > { %812 = vmatmul.mubr.bf16.gmra.mrb[4].mxu0 %v877_v14  ;;  %820 = vmatmul.mubr.bf16.gmra.mrb[4].mxu1 %v878_v15 }
  0xfa   : > { %v809_v16 = vpop.f32.mrb[0].mxu0  ;;  %v817_v17 = vpop.f32.mrb[0].mxu1 }
  0xfb   : > { %v391_v18 = vpop.f32.mrb[1].mxu0  ;;  %v423_v19 = vpop.f32.mrb[1].mxu1 }
  0xfc   : > { %v810_v20 = vpop.f32.mrb[2].mxu0  ;;  %v818_v21 = vpop.f32.mrb[2].mxu1 }
  0xfd   : > { %v736_v22 = vpack.c.bf16 %v810_v20, %v809_v16  ;;  %v756_v23 = vpack.c.bf16 %v818_v21, %v817_v17  ;;  %v394_v24 = vpop.f32.mrb[3].mxu0  ;;  %v426_v25 = vpop.f32.mrb[3].mxu1 }
  0xfe   : > { %v731_v26 = vpack.c.bf16 %v394_v24, %v391_v18  ;;  %v751_v27 = vpack.c.bf16 %v426_v25, %v423_v19 }
  0xff   : > { %768 = vst [vmem:[%s190_s8 + $0x8] sm:$0xff] %v736_v22   ;;  %772 = vst [vmem:[%s190_s8 + $0x28] sm:$0xff] %v756_v23  }
 0x100   : > { %732 = vst [vmem:[%s190_s8] sm:$0xff] %v731_v26   ;;  %771 = vst [vmem:[%s190_s8 + $0x20] sm:$0xff] %v751_v27  }
 0x102   : > { %v813_v28 = vpop.f32.mrb[4].mxu0  ;;  %v821_v29 = vpop.f32.mrb[4].mxu1 }
 0x103   : > { %v407_v30 = vpop.f32.mrb[5].mxu0  ;;  %v439_v31 = vpop.f32.mrb[5].mxu1 }
 0x104   : > { %v814_v32 = vpop.f32.mrb[6].mxu0  ;;  %v822_v33 = vpop.f32.mrb[6].mxu1 }
 0x105   : > { %v746_v34 = vpack.c.bf16 %v814_v32, %v813_v28  ;;  %v766_v35 = vpack.c.bf16 %v822_v33, %v821_v29  ;;  %v410_v36 = vpop.f32.mrb[7].mxu0  ;;  %v442_v37 = vpop.f32.mrb[7].mxu1 }
 0x106   : > { %v741_v38 = vpack.c.bf16 %v410_v36, %v407_v30  ;;  %v761_v39 = vpack.c.bf16 %v442_v37, %v439_v31 }
 0x107   : > { %770 = vst [vmem:[%s190_s8 + $0x18] sm:$0xff] %v746_v34   ;;  %774 = vst [vmem:[%s190_s8 + $0x38] sm:$0xff] %v766_v35  }
 0x108   : > { %769 = vst [vmem:[%s190_s8 + $0x10] sm:$0xff] %v741_v38   ;;  %773 = vst [vmem:[%s190_s8 + $0x30] sm:$0xff] %v761_v39  }
 0x109 PF: > { %s12_s11 = sadd.s32 1, %s901_s11   ;;  %s995_s9 = smov %s897_s10 }
 0x10a   : > { %p9_p5 = scmp.ge.s32.totalorder %s12_s11, 5   ;;  %s996_s10 = smov %s998_s12 }
 0x10c   :  { %11 = sbr.rel (!%p9_p5) target bundleno = 2 (0x2), region = 69 }

</bundles_post_ra>
